<compile_context>
chip_gen: v7x
topology: tpu7x:2x2x1
jax: 0.10.0
libtpu: 0.0.40
codegen_flags: <defaults>
</compile_context>

<pallas_src>
import functools
import math

import jax
import jax.numpy as jnp
from jax import lax
from jax.experimental import pallas as pl
from jax.experimental.pallas import tpu as pltpu


# ---------------------------------------------------------------------------
# Generation-aware VMEM budget / lane-tile selection
# ---------------------------------------------------------------------------
def _vmem_limit_bytes():
    """~3/4 of physical VMEM (96 MiB on v5e/v6e, 48 MiB on v7x); safe fallback 48 MiB."""
    cap = 64 * 1024 * 1024
    try:
        cap = int(pltpu.get_tpu_info().vmem_capacity_bytes)
    except Exception:
        pass
    return max(32 * 1024 * 1024, min((cap * 3) // 4, 96 * 1024 * 1024))


def _select_lane_tile(hw, per_col_bytes, budget, max_tile=8192):
    """Largest lane tile (multiple of 128 dividing hw, or hw itself) that fits the budget."""
    cap = min(max_tile, max(128, budget // max(per_col_bytes, 1)))
    if hw <= cap:
        return hw
    t = (cap // 128) * 128
    while t >= 128:
        if hw % t == 0:
            return t
        t -= 128
    # TODO(synk): awkwardly-factored H*W falls back to a single full-width block, which may
    #             exceed the scoped-VMEM budget for very large images.
    return hw


# ---------------------------------------------------------------------------
# In-kernel 3x3 conv (9 accumulating MXU dots over shifted lane slices)
# ---------------------------------------------------------------------------
def _conv_block(xe_ref, w_ref, b_ref, em_ref, *, width, thw, grid_m):
    """One (K, thw) output tile of a 3x3 / pad=1 conv.

    xe_ref : (1, Cin, H*W + 2*(width+1))  flattened image, zero-padded by width+1 per side
    w_ref  : (9, K, Cin)                  per-tap weights, tap t = (di+1)*3 + (dj+1)
    b_ref  : (K, 1)
    em_ref : (2, thw)                     horizontal validity masks for dj = -1 / +1
    """
    kout = w_ref.shape[1]
    pad = width + 1
    if grid_m == 1:
        base = pad                                             # fully static path
    else:
        base = pl.multiple_of(pl.program_id(1) * thw, 128) + pad
    em_l = em_ref[0:1, :]
    em_r = em_ref[1:2, :]
    acc = jnp.zeros((kout, thw), jnp.float32)
    t = 0
    for di in (-1, 0, 1):
        for dj in (-1, 0, 1):
            sl = xe_ref[0, :, pl.ds(base + di * width + dj, thw)]    # (Cin, thw)
            if dj == -1:
                sl = sl * em_l       # kill wrap from the previous row (w == 0 columns)
            elif dj == 1:
                sl = sl * em_r       # kill wrap from the next row (w == W-1 columns)
            acc = acc + jnp.dot(w_ref[t], sl, preferred_element_type=jnp.float32)
            t += 1
    return acc + b_ref[...]


def _conv_only_kernel(xe_ref, w_ref, b_ref, em_ref, pred_ref, *, width, thw, grid_m):
    pred = _conv_block(xe_ref, w_ref, b_ref, em_ref, width=width, thw=thw, grid_m=grid_m)
    pred_ref[0] = pred.astype(pred_ref.dtype)


def _fused_conv_loss_kernel(xe_ref, w_ref, b_ref, em_ref, hm_ref, mk_ref,
                            pred_ref, part_ref, *, width, thw, grid_m,
                            wloss, alpha, omega, epsilon, theta):
    pred = _conv_block(xe_ref, w_ref, b_ref, em_ref, width=width, thw=thw, grid_m=grid_m)
    pred_ref[0] = pred.astype(pred_ref.dtype)

    # Weighted Adaptive-Wing loss on this tile, consumed straight from registers.
    y = hm_ref[0].astype(jnp.float32)
    m = mk_ref[0].astype(jnp.float32)            # mask arrives in its narrow dtype (int8)
    dy = y - pred
    ady = jnp.abs(dy)
    aly = alpha - y                              # > 0 for heatmap targets in [0, 1]
    small = ady < theta
    # Select the exponent argument BEFORE the transcendental: 1 exp + 2 log + 1 recip per
    # element (vs ~6 EUP ops in the naive two-branch formulation).
    log_toe = math.log(theta / epsilon)
    log_arg = jnp.where(small, jnp.log(jnp.maximum(ady * (1.0 / epsilon), 1e-20)), log_toe)
    pow_sel = jnp.exp(aly * log_arg)             # (|dy|/eps)^aly  or  (theta/eps)^aly
    rec = pl.reciprocal(1.0 + pow_sel, approx=False)
    a_coef = (omega / theta) * aly * pow_sel * rec
    loss = omega * jnp.log(1.0 + pow_sel) + jnp.where(small, 0.0, a_coef * (ady - theta))
    weighted = loss * (wloss * m + 1.0)
    part_ref[...] = jnp.broadcast_to(jnp.sum(weighted), (1, 1, 1, 128)).astype(jnp.float32)


# ---------------------------------------------------------------------------
# Wrappers
# ---------------------------------------------------------------------------
_LOSS_DEFAULTS = dict(wloss=10.0, alpha=2.1, omega=14.0, epsilon=1.0, theta=0.5)


def _prep_conv_operands(image, conv_w, conv_b):
    B, Cin, H, W = image.shape
    K = conv_w.shape[0]
    HW = H * W
    pad = W + 1
    # Flattened image, zero-padded by (W+1) on each end of the H*W axis: every 3x3 tap of an
    # output tile becomes a contiguous lane slice (vertical out-of-range taps land in the zero
    # pad; horizontal wrap is removed in-kernel with the edge masks below).
    xe = jnp.pad(image.astype(jnp.float32).reshape(B, Cin, HW), ((0, 0), (0, 0), (pad, pad)))
    w_taps = jnp.transpose(conv_w.astype(jnp.float32), (2, 3, 0, 1)).reshape(9, K, Cin)
    b2 = conv_b.astype(jnp.float32).reshape(K, 1)
    col = jnp.arange(HW, dtype=jnp.int32) % W
    em = jnp.stack([col != 0, col != (W - 1)]).astype(jnp.float32)     # (2, HW)
    return xe, w_taps, b2, em


def conv2d_3x3_flat(image, conv_w, conv_b):
    """3x3 / pad=1 / stride=1 conv.  Returns (B, K, H*W) float32 (lane-dense layout)."""
    B, Cin, H, W = image.shape
    K = conv_w.shape[0]
    HW = H * W
    HWe = HW + 2 * (W + 1)
    xe, w_taps, b2, em = _prep_conv_operands(image, conv_w, conv_b)

    vmem_limit = _vmem_limit_bytes()
    resident = 2 * Cin * HWe * 4 + 9 * K * Cin * 4 + K * 4
    per_col = 2 * (K * 4 + 2 * 4)
    thw = _select_lane_tile(HW, per_col, max(vmem_limit - resident - (4 << 20), 1 << 20))
    gm = HW // thw

    kern = functools.partial(_conv_only_kernel, width=W, thw=thw, grid_m=gm)
    return pl.pallas_call(
        kern,
        out_shape=jax.ShapeDtypeStruct((B, K, HW), jnp.float32),
        grid=(B, gm),
        in_specs=[
            pl.BlockSpec((1, Cin, HWe), lambda b, m: (b, 0, 0)),
            pl.BlockSpec((9, K, Cin), lambda b, m: (0, 0, 0)),
            pl.BlockSpec((K, 1), lambda b, m: (0, 0)),
            pl.BlockSpec((2, thw), lambda b, m: (0, m)),
        ],
        out_specs=pl.BlockSpec((1, K, thw), lambda b, m: (b, 0, m)),
        compiler_params=pltpu.CompilerParams(
            dimension_semantics=("parallel", "parallel"),
            vmem_limit_bytes=vmem_limit,
        ),
    )(xe, w_taps, b2, em)


def conv_and_weighted_awing_loss(image, heatmaps, mask, conv_w, conv_b, **loss_kw):
    """Fused conv + weighted Adaptive-Wing loss.  Returns (pred_flat (B,K,H*W), loss scalar)."""
    params = dict(_LOSS_DEFAULTS, **loss_kw)
    B, Cin, H, W = image.shape
    K = conv_w.shape[0]
    HW = H * W
    HWe = HW + 2 * (W + 1)
    xe, w_taps, b2, em = _prep_conv_operands(image, conv_w, conv_b)
    hm = heatmaps.reshape(B, K, HW)                 # free reshape (NCHW is contiguous)
    mk = mask.reshape(B, K, HW)                     # keep narrow dtype; cast in-kernel

    vmem_limit = _vmem_limit_bytes()
    resident = 2 * Cin * HWe * 4 + 9 * K * Cin * 4 + K * 4
    per_col = 2 * (K * (4 + hm.dtype.itemsize + mk.dtype.itemsize) + 2 * 4)
    thw = _select_lane_tile(HW, per_col, max(vmem_limit - resident - (4 << 20), 1 << 20))
    gm = HW // thw

    kern = functools.partial(_fused_conv_loss_kernel, width=W, thw=thw, grid_m=gm, **params)
    pred_flat, parts = pl.pallas_call(
        kern,
        out_shape=(jax.ShapeDtypeStruct((B, K, HW), jnp.float32),
                   jax.ShapeDtypeStruct((B, gm, 1, 128), jnp.float32)),
        grid=(B, gm),
        in_specs=[
            pl.BlockSpec((1, Cin, HWe), lambda b, m: (b, 0, 0)),
            pl.BlockSpec((9, K, Cin), lambda b, m: (0, 0, 0)),
            pl.BlockSpec((K, 1), lambda b, m: (0, 0)),
            pl.BlockSpec((2, thw), lambda b, m: (0, m)),
            pl.BlockSpec((1, K, thw), lambda b, m: (b, 0, m)),
            pl.BlockSpec((1, K, thw), lambda b, m: (b, 0, m)),
        ],
        out_specs=(
            pl.BlockSpec((1, K, thw), lambda b, m: (b, 0, m)),
            pl.BlockSpec((1, 1, 1, 128), lambda b, m: (b, m, 0, 0)),
        ),
        compiler_params=pltpu.CompilerParams(
            dimension_semantics=("parallel", "parallel"),
            vmem_limit_bytes=vmem_limit,
        ),
    )(xe, w_taps, b2, em, hm, mk)

    loss = jnp.sum(parts[:, :, 0, 0]) * (1.0 / float(B * K * HW))
    return pred_flat, loss


def net_wrapper_forward(image, heatmaps, weights, conv_w, conv_b, train=True):
    """JAX/Pallas equivalent of NetWrapper.forward (net := Conv2d(Cin, K, 3, padding=1))."""
    B, _, H, W = image.shape
    K = conv_w.shape[0]
    if not train:
        pred_flat = conv2d_3x3_flat(image, conv_w, conv_b)
        return pred_flat.reshape(B, K, H, W), jnp.float32(0.0)
    pred_flat, loss = conv_and_weighted_awing_loss(image, heatmaps, weights, conv_w, conv_b)
    return pred_flat.reshape(B, K, H, W), loss


# ---------------------------------------------------------------------------
# Pure-JAX reference (for a loose sanity check only)
# ---------------------------------------------------------------------------
def _reference_forward(image, heatmaps, mask, conv_w, conv_b,
                       wloss=10.0, alpha=2.1, omega=14.0, epsilon=1.0, theta=0.5):
    pred = lax.conv_general_dilated(
        image.astype(jnp.float32), conv_w.astype(jnp.float32),
        window_strides=(1, 1), padding=((1, 1), (1, 1)),
        dimension_numbers=("NCHW", "OIHW", "NCHW"),
    ) + conv_b.astype(jnp.float32)[None, :, None, None]
    y = heatmaps.astype(jnp.float32)
    m = mask.astype(jnp.float32)
    ady = jnp.abs(y - pred)
    aly = alpha - y
    pow_t = (theta / epsilon) ** aly
    A = omega * (1.0 / (1.0 + pow_t)) * aly * (theta / epsilon) ** (aly - 1.0) / epsilon
    C = theta * A - omega * jnp.log1p(pow_t)
    case1 = omega * jnp.log1p((ady / epsilon) ** aly)
    case2 = A * ady - C
    l = jnp.where(ady < theta, case1, case2)
    return pred, jnp.mean(l * (wloss * m + 1.0))


if __name__ == "__main__":
    B, Cin, H, W = 2, 4, 16, 16      # image
    K = 8                            # heatmap channels

    key = jax.random.PRNGKey(0)
    k_img, k_hm, k_msk, k_w, k_b = jax.random.split(key, 5)

    image = jax.random.normal(k_img, (B, Cin, H, W), dtype=jnp.float32)
    heatmaps = jax.random.uniform(k_hm, (B, K, H, W), dtype=jnp.float32)          # targets in [0,1]
    weights = (jax.random.uniform(k_msk, (B, K, H, W)) > 0.5).astype(jnp.int8)    # binary mask M (narrow dtype)

    # deterministic conv parameters (stand-in `net`: Conv2d(Cin, K, 3, padding=1))
    conv_w = 0.05 * jax.random.normal(k_w, (K, Cin, 3, 3), dtype=jnp.float32)
    conv_b = 0.01 * jax.random.normal(k_b, (K,), dtype=jnp.float32)

    fwd = jax.jit(net_wrapper_forward, static_argnames=("train",))
    pred, loss = fwd(image, heatmaps, weights, conv_w, conv_b, train=True)
    jax.block_until_ready(pred)
    jax.block_until_ready(loss)

    assert pred.shape == (B, K, H, W)
    assert loss.shape == ()
    assert bool(jnp.isfinite(loss))

    # loose sanity check against a pure-JAX reference of the same forward
    ref_pred, ref_loss = _reference_forward(image, heatmaps, weights, conv_w, conv_b)
    assert float(jnp.max(jnp.abs(pred - ref_pred))) < 1e-2
    assert abs(float(loss) - float(ref_loss)) <= 1e-2 * max(1.0, abs(float(ref_loss)))

    print("KERNEL_OK")
</pallas_src>

<mosaic_0001>
module attributes {stable_mosaic.version = 11 : i64} {
  func.func @_fused_conv_loss_kernel(%arg0: i32, %arg1: i32, %arg2: memref<1x4x290xf32, #tpu.memory_space<vmem>>, %arg3: memref<9x8x4xf32, #tpu.memory_space<vmem>>, %arg4: memref<8x1xf32, #tpu.memory_space<vmem>>, %arg5: memref<2x256xf32, #tpu.memory_space<vmem>>, %arg6: memref<1x8x256xf32, #tpu.memory_space<vmem>>, %arg7: memref<1x8x256xi8, #tpu.memory_space<vmem>>, %arg8: memref<1x8x256xf32, #tpu.memory_space<vmem>>, %arg9: memref<1x1x1x128xf32, #tpu.memory_space<vmem>>) attributes {dimension_semantics = [#tpu.dimension_semantics<parallel>, #tpu.dimension_semantics<parallel>], iteration_bounds = array<i64: 2, 1>, scalar_prefetch = 0 : i64, scratch_operands = 0 : i64, tpu.core_type = #tpu.core_type<tc>, window_params = [{transform_indices = @transform_0, window_bounds = array<i64: 1, 4, 290>}, {pipeline_mode = #tpu.pipeline_mode<synchronous>, transform_indices = @transform_1, window_bounds = array<i64: 9, 8, 4>}, {pipeline_mode = #tpu.pipeline_mode<synchronous>, transform_indices = @transform_2, window_bounds = array<i64: 8, 1>}, {transform_indices = @transform_3, window_bounds = array<i64: 2, 256>}, {transform_indices = @transform_4, window_bounds = array<i64: 1, 8, 256>}, {transform_indices = @transform_5, window_bounds = array<i64: 1, 8, 256>}, {transform_indices = @transform_6, window_bounds = array<i64: 1, 8, 256>}, {transform_indices = @transform_7, window_bounds = array<i64: 1, 1, 1, 128>}]} {
    %c0 = arith.constant 0 : index
    %c0_0 = arith.constant 0 : index
    %0 = vector.load %arg5[%c0, %c0_0] : memref<2x256xf32, #tpu.memory_space<vmem>>, vector<1x256xf32>
    %c1 = arith.constant 1 : index
    %c0_1 = arith.constant 0 : index
    %1 = vector.load %arg5[%c1, %c0_1] : memref<2x256xf32, #tpu.memory_space<vmem>>, vector<1x256xf32>
    %cst = arith.constant 0.000000e+00 : f32
    %2 = vector.broadcast %cst : f32 to vector<8x256xf32>
    %c0_2 = arith.constant 0 : index
    %c0_3 = arith.constant 0 : index
    %c0_4 = arith.constant 0 : index
    %3 = vector.load %arg2[%c0_2, %c0_3, %c0_4] : memref<1x4x290xf32, #tpu.memory_space<vmem>>, vector<1x4x256xf32>
    %4 = vector.shape_cast %3 : vector<1x4x256xf32> to vector<4x256xf32>
    %5 = vector.broadcast %0 : vector<1x256xf32> to vector<4x256xf32>
    %6 = arith.mulf %4, %5 : vector<4x256xf32>
    %c0_5 = arith.constant 0 : index
    %c0_6 = arith.constant 0 : index
    %c0_7 = arith.constant 0 : index
    %7 = vector.load %arg3[%c0_5, %c0_6, %c0_7] : memref<9x8x4xf32, #tpu.memory_space<vmem>>, vector<1x8x4xf32>
    %8 = vector.shape_cast %7 : vector<1x8x4xf32> to vector<8x4xf32>
    %cst_8 = arith.constant dense<0.000000e+00> : vector<8x256xf32>
    %9 = tpu.matmul %8, %6, %cst_8 {dimension_numbers = #tpu.dot_dimension_numbers<[1], [0], [0], [1], [0, 0, 1, 1], [], []>} : vector<8x4xf32>, vector<4x256xf32>, vector<8x256xf32> -> vector<8x256xf32>
    %10 = arith.addf %2, %9 : vector<8x256xf32>
    %c0_9 = arith.constant 0 : index
    %c0_10 = arith.constant 0 : index
    %c1_11 = arith.constant 1 : index
    %11 = vector.load %arg2[%c0_9, %c0_10, %c1_11] : memref<1x4x290xf32, #tpu.memory_space<vmem>>, vector<1x4x256xf32>
    %12 = vector.shape_cast %11 : vector<1x4x256xf32> to vector<4x256xf32>
    %c1_12 = arith.constant 1 : index
    %c0_13 = arith.constant 0 : index
    %c0_14 = arith.constant 0 : index
    %13 = vector.load %arg3[%c1_12, %c0_13, %c0_14] : memref<9x8x4xf32, #tpu.memory_space<vmem>>, vector<1x8x4xf32>
    %14 = vector.shape_cast %13 : vector<1x8x4xf32> to vector<8x4xf32>
    %cst_15 = arith.constant dense<0.000000e+00> : vector<8x256xf32>
    %15 = tpu.matmul %14, %12, %cst_15 {dimension_numbers = #tpu.dot_dimension_numbers<[1], [0], [0], [1], [0, 0, 1, 1], [], []>} : vector<8x4xf32>, vector<4x256xf32>, vector<8x256xf32> -> vector<8x256xf32>
    %16 = arith.addf %10, %15 : vector<8x256xf32>
    %c0_16 = arith.constant 0 : index
    %c0_17 = arith.constant 0 : index
    %c2 = arith.constant 2 : index
    %17 = vector.load %arg2[%c0_16, %c0_17, %c2] : memref<1x4x290xf32, #tpu.memory_space<vmem>>, vector<1x4x256xf32>
    %18 = vector.shape_cast %17 : vector<1x4x256xf32> to vector<4x256xf32>
    %19 = vector.broadcast %1 : vector<1x256xf32> to vector<4x256xf32>
    %20 = arith.mulf %18, %19 : vector<4x256xf32>
    %c2_18 = arith.constant 2 : index
    %c0_19 = arith.constant 0 : index
    %c0_20 = arith.constant 0 : index
    %21 = vector.load %arg3[%c2_18, %c0_19, %c0_20] : memref<9x8x4xf32, #tpu.memory_space<vmem>>, vector<1x8x4xf32>
    %22 = vector.shape_cast %21 : vector<1x8x4xf32> to vector<8x4xf32>
    %cst_21 = arith.constant dense<0.000000e+00> : vector<8x256xf32>
    %23 = tpu.matmul %22, %20, %cst_21 {dimension_numbers = #tpu.dot_dimension_numbers<[1], [0], [0], [1], [0, 0, 1, 1], [], []>} : vector<8x4xf32>, vector<4x256xf32>, vector<8x256xf32> -> vector<8x256xf32>
    %24 = arith.addf %16, %23 : vector<8x256xf32>
    %c0_22 = arith.constant 0 : index
    %c0_23 = arith.constant 0 : index
    %c16 = arith.constant 16 : index
    %25 = vector.load %arg2[%c0_22, %c0_23, %c16] : memref<1x4x290xf32, #tpu.memory_space<vmem>>, vector<1x4x256xf32>
    %26 = vector.shape_cast %25 : vector<1x4x256xf32> to vector<4x256xf32>
    %27 = vector.broadcast %0 : vector<1x256xf32> to vector<4x256xf32>
    %28 = arith.mulf %26, %27 : vector<4x256xf32>
    %c3 = arith.constant 3 : index
    %c0_24 = arith.constant 0 : index
    %c0_25 = arith.constant 0 : index
    %29 = vector.load %arg3[%c3, %c0_24, %c0_25] : memref<9x8x4xf32, #tpu.memory_space<vmem>>, vector<1x8x4xf32>
    %30 = vector.shape_cast %29 : vector<1x8x4xf32> to vector<8x4xf32>
    %cst_26 = arith.constant dense<0.000000e+00> : vector<8x256xf32>
    %31 = tpu.matmul %30, %28, %cst_26 {dimension_numbers = #tpu.dot_dimension_numbers<[1], [0], [0], [1], [0, 0, 1, 1], [], []>} : vector<8x4xf32>, vector<4x256xf32>, vector<8x256xf32> -> vector<8x256xf32>
    %32 = arith.addf %24, %31 : vector<8x256xf32>
    %c0_27 = arith.constant 0 : index
    %c0_28 = arith.constant 0 : index
    %c17 = arith.constant 17 : index
    %33 = vector.load %arg2[%c0_27, %c0_28, %c17] : memref<1x4x290xf32, #tpu.memory_space<vmem>>, vector<1x4x256xf32>
    %34 = vector.shape_cast %33 : vector<1x4x256xf32> to vector<4x256xf32>
    %c4 = arith.constant 4 : index
    %c0_29 = arith.constant 0 : index
    %c0_30 = arith.constant 0 : index
    %35 = vector.load %arg3[%c4, %c0_29, %c0_30] : memref<9x8x4xf32, #tpu.memory_space<vmem>>, vector<1x8x4xf32>
    %36 = vector.shape_cast %35 : vector<1x8x4xf32> to vector<8x4xf32>
    %cst_31 = arith.constant dense<0.000000e+00> : vector<8x256xf32>
    %37 = tpu.matmul %36, %34, %cst_31 {dimension_numbers = #tpu.dot_dimension_numbers<[1], [0], [0], [1], [0, 0, 1, 1], [], []>} : vector<8x4xf32>, vector<4x256xf32>, vector<8x256xf32> -> vector<8x256xf32>
    %38 = arith.addf %32, %37 : vector<8x256xf32>
    %c0_32 = arith.constant 0 : index
    %c0_33 = arith.constant 0 : index
    %c18 = arith.constant 18 : index
    %39 = vector.load %arg2[%c0_32, %c0_33, %c18] : memref<1x4x290xf32, #tpu.memory_space<vmem>>, vector<1x4x256xf32>
    %40 = vector.shape_cast %39 : vector<1x4x256xf32> to vector<4x256xf32>
    %41 = vector.broadcast %1 : vector<1x256xf32> to vector<4x256xf32>
    %42 = arith.mulf %40, %41 : vector<4x256xf32>
    %c5 = arith.constant 5 : index
    %c0_34 = arith.constant 0 : index
    %c0_35 = arith.constant 0 : index
    %43 = vector.load %arg3[%c5, %c0_34, %c0_35] : memref<9x8x4xf32, #tpu.memory_space<vmem>>, vector<1x8x4xf32>
    %44 = vector.shape_cast %43 : vector<1x8x4xf32> to vector<8x4xf32>
    %cst_36 = arith.constant dense<0.000000e+00> : vector<8x256xf32>
    %45 = tpu.matmul %44, %42, %cst_36 {dimension_numbers = #tpu.dot_dimension_numbers<[1], [0], [0], [1], [0, 0, 1, 1], [], []>} : vector<8x4xf32>, vector<4x256xf32>, vector<8x256xf32> -> vector<8x256xf32>
    %46 = arith.addf %38, %45 : vector<8x256xf32>
    %c0_37 = arith.constant 0 : index
    %c0_38 = arith.constant 0 : index
    %c32 = arith.constant 32 : index
    %47 = vector.load %arg2[%c0_37, %c0_38, %c32] : memref<1x4x290xf32, #tpu.memory_space<vmem>>, vector<1x4x256xf32>
    %48 = vector.shape_cast %47 : vector<1x4x256xf32> to vector<4x256xf32>
    %49 = vector.broadcast %0 : vector<1x256xf32> to vector<4x256xf32>
    %50 = arith.mulf %48, %49 : vector<4x256xf32>
    %c6 = arith.constant 6 : index
    %c0_39 = arith.constant 0 : index
    %c0_40 = arith.constant 0 : index
    %51 = vector.load %arg3[%c6, %c0_39, %c0_40] : memref<9x8x4xf32, #tpu.memory_space<vmem>>, vector<1x8x4xf32>
    %52 = vector.shape_cast %51 : vector<1x8x4xf32> to vector<8x4xf32>
    %cst_41 = arith.constant dense<0.000000e+00> : vector<8x256xf32>
    %53 = tpu.matmul %52, %50, %cst_41 {dimension_numbers = #tpu.dot_dimension_numbers<[1], [0], [0], [1], [0, 0, 1, 1], [], []>} : vector<8x4xf32>, vector<4x256xf32>, vector<8x256xf32> -> vector<8x256xf32>
    %54 = arith.addf %46, %53 : vector<8x256xf32>
    %c0_42 = arith.constant 0 : index
    %c0_43 = arith.constant 0 : index
    %c33 = arith.constant 33 : index
    %55 = vector.load %arg2[%c0_42, %c0_43, %c33] : memref<1x4x290xf32, #tpu.memory_space<vmem>>, vector<1x4x256xf32>
    %56 = vector.shape_cast %55 : vector<1x4x256xf32> to vector<4x256xf32>
    %c7 = arith.constant 7 : index
    %c0_44 = arith.constant 0 : index
    %c0_45 = arith.constant 0 : index
    %57 = vector.load %arg3[%c7, %c0_44, %c0_45] : memref<9x8x4xf32, #tpu.memory_space<vmem>>, vector<1x8x4xf32>
    %58 = vector.shape_cast %57 : vector<1x8x4xf32> to vector<8x4xf32>
    %cst_46 = arith.constant dense<0.000000e+00> : vector<8x256xf32>
    %59 = tpu.matmul %58, %56, %cst_46 {dimension_numbers = #tpu.dot_dimension_numbers<[1], [0], [0], [1], [0, 0, 1, 1], [], []>} : vector<8x4xf32>, vector<4x256xf32>, vector<8x256xf32> -> vector<8x256xf32>
    %60 = arith.addf %54, %59 : vector<8x256xf32>
    %c0_47 = arith.constant 0 : index
    %c0_48 = arith.constant 0 : index
    %c34 = arith.constant 34 : index
    %61 = vector.load %arg2[%c0_47, %c0_48, %c34] : memref<1x4x290xf32, #tpu.memory_space<vmem>>, vector<1x4x256xf32>
    %62 = vector.shape_cast %61 : vector<1x4x256xf32> to vector<4x256xf32>
    %63 = vector.broadcast %1 : vector<1x256xf32> to vector<4x256xf32>
    %64 = arith.mulf %62, %63 : vector<4x256xf32>
    %c8 = arith.constant 8 : index
    %c0_49 = arith.constant 0 : index
    %c0_50 = arith.constant 0 : index
    %65 = vector.load %arg3[%c8, %c0_49, %c0_50] : memref<9x8x4xf32, #tpu.memory_space<vmem>>, vector<1x8x4xf32>
    %66 = vector.shape_cast %65 : vector<1x8x4xf32> to vector<8x4xf32>
    %cst_51 = arith.constant dense<0.000000e+00> : vector<8x256xf32>
    %67 = tpu.matmul %66, %64, %cst_51 {dimension_numbers = #tpu.dot_dimension_numbers<[1], [0], [0], [1], [0, 0, 1, 1], [], []>} : vector<8x4xf32>, vector<4x256xf32>, vector<8x256xf32> -> vector<8x256xf32>
    %68 = arith.addf %60, %67 : vector<8x256xf32>
    %c0_52 = arith.constant 0 : index
    %c0_53 = arith.constant 0 : index
    %69 = vector.load %arg4[%c0_52, %c0_53] : memref<8x1xf32, #tpu.memory_space<vmem>>, vector<8x1xf32>
    %70 = vector.broadcast %69 : vector<8x1xf32> to vector<8x256xf32>
    %71 = arith.addf %68, %70 : vector<8x256xf32>
    %c0_54 = arith.constant 0 : index
    %c0_55 = arith.constant 0 : index
    %c0_56 = arith.constant 0 : index
    %72 = vector.load %arg8[%c0_54, %c0_55, %c0_56] : memref<1x8x256xf32, #tpu.memory_space<vmem>>, vector<1x8x256xf32>
    %73 = vector.shape_cast %72 : vector<1x8x256xf32> to vector<8x256xf32>
    %74 = vector.shape_cast %71 : vector<8x256xf32> to vector<1x8x256xf32>
    tpu.vector_store %arg8[%c0_54, %c0_55, %c0_56], %74 {strides = array<i32>} : memref<1x8x256xf32, #tpu.memory_space<vmem>>, vector<1x8x256xf32>,
    %c0_57 = arith.constant 0 : index
    %c0_58 = arith.constant 0 : index
    %c0_59 = arith.constant 0 : index
    %75 = vector.load %arg6[%c0_57, %c0_58, %c0_59] : memref<1x8x256xf32, #tpu.memory_space<vmem>>, vector<1x8x256xf32>
    %76 = vector.shape_cast %75 : vector<1x8x256xf32> to vector<8x256xf32>
    %c0_60 = arith.constant 0 : index
    %c0_61 = arith.constant 0 : index
    %c0_62 = arith.constant 0 : index
    %77 = vector.load %arg7[%c0_60, %c0_61, %c0_62] : memref<1x8x256xi8, #tpu.memory_space<vmem>>, vector<1x8x256xi8>
    %78 = vector.shape_cast %77 : vector<1x8x256xi8> to vector<8x256xi8>
    %79 = arith.sitofp %78 : vector<8x256xi8> to vector<8x256xf32>
    %80 = arith.subf %76, %71 : vector<8x256xf32>
    %81 = math.absf %80 : vector<8x256xf32>
    %cst_63 = arith.constant 2.100000e+00 : f32
    %82 = vector.broadcast %cst_63 : f32 to vector<8x256xf32>
    %83 = arith.subf %82, %76 : vector<8x256xf32>
    %cst_64 = arith.constant 5.000000e-01 : f32
    %84 = vector.broadcast %cst_64 : f32 to vector<8x256xf32>
    %85 = arith.cmpf olt, %81, %84 : vector<8x256xf32>
    %cst_65 = arith.constant 1.000000e+00 : f32
    %86 = vector.broadcast %cst_65 : f32 to vector<8x256xf32>
    %87 = arith.mulf %81, %86 : vector<8x256xf32>
    %cst_66 = arith.constant 9.99999968E-21 : f32
    %88 = vector.broadcast %cst_66 : f32 to vector<8x256xf32>
    %89 = arith.maximumf %87, %88 : vector<8x256xf32>
    %90 = math.log %89 : vector<8x256xf32>
    %cst_67 = arith.constant -0.693147182 : f32
    %91 = vector.broadcast %cst_67 : f32 to vector<8x256xf32>
    %92 = arith.select %85, %90, %91 : vector<8x256xi1>, vector<8x256xf32>
    %93 = arith.mulf %83, %92 : vector<8x256xf32>
    %94 = math.exp %93 : vector<8x256xf32>
    %cst_68 = arith.constant 1.000000e+00 : f32
    %95 = vector.broadcast %cst_68 : f32 to vector<8x256xf32>
    %96 = arith.addf %95, %94 : vector<8x256xf32>
    %97 = tpu.reciprocal %96 : vector<8x256xf32> -> vector<8x256xf32>
    %cst_69 = arith.constant 2.800000e+01 : f32
    %98 = vector.broadcast %cst_69 : f32 to vector<8x256xf32>
    %99 = arith.mulf %98, %83 : vector<8x256xf32>
    %100 = arith.mulf %99, %94 : vector<8x256xf32>
    %101 = arith.mulf %100, %97 : vector<8x256xf32>
    %cst_70 = arith.constant 1.000000e+00 : f32
    %102 = vector.broadcast %cst_70 : f32 to vector<8x256xf32>
    %103 = arith.addf %102, %94 : vector<8x256xf32>
    %104 = math.log %103 : vector<8x256xf32>
    %cst_71 = arith.constant 1.400000e+01 : f32
    %105 = vector.broadcast %cst_71 : f32 to vector<8x256xf32>
    %106 = arith.mulf %105, %104 : vector<8x256xf32>
    %cst_72 = arith.constant 5.000000e-01 : f32
    %107 = vector.broadcast %cst_72 : f32 to vector<8x256xf32>
    %108 = arith.subf %81, %107 : vector<8x256xf32>
    %109 = arith.mulf %101, %108 : vector<8x256xf32>
    %cst_73 = arith.constant 0.000000e+00 : f32
    %110 = vector.broadcast %cst_73 : f32 to vector<8x256xf32>
    %111 = arith.select %85, %110, %109 : vector<8x256xi1>, vector<8x256xf32>
    %112 = arith.addf %106, %111 : vector<8x256xf32>
    %cst_74 = arith.constant 1.000000e+01 : f32
    %113 = vector.broadcast %cst_74 : f32 to vector<8x256xf32>
    %114 = arith.mulf %113, %79 : vector<8x256xf32>
    %cst_75 = arith.constant 1.000000e+00 : f32
    %115 = vector.broadcast %cst_75 : f32 to vector<8x256xf32>
    %116 = arith.addf %114, %115 : vector<8x256xf32>
    %117 = arith.mulf %112, %116 : vector<8x256xf32>
    %118 = vector.shape_cast %117 : vector<8x256xf32> to vector<1x8x256xf32>
    %cst_76 = arith.constant dense<0.000000e+00> : vector<1xf32>
    %119 = vector.multi_reduction <add>, %118, %cst_76 [1, 2] : vector<1x8x256xf32> to vector<1xf32>
    %120 = vector.shape_cast %119 : vector<1xf32> to vector<1x1x1xf32>
    %121 = vector.extract %120[0, 0, 0] : f32 from vector<1x1x1xf32>
    %122 = vector.broadcast %121 : f32 to vector<1x1x1x128xf32>
    %c0_77 = arith.constant 0 : index
    %c0_78 = arith.constant 0 : index
    %c0_79 = arith.constant 0 : index
    %c0_80 = arith.constant 0 : index
    %123 = vector.load %arg9[%c0_77, %c0_78, %c0_79, %c0_80] : memref<1x1x1x128xf32, #tpu.memory_space<vmem>>, vector<1x1x1x128xf32>
    tpu.vector_store %arg9[%c0_77, %c0_78, %c0_79, %c0_80], %122 {strides = array<i32>} : memref<1x1x1x128xf32, #tpu.memory_space<vmem>>, vector<1x1x1x128xf32>,
    return
  }
  func.func @transform_0(%arg0: i32, %arg1: i32) -> (i32, i32, i32) {
    %c0_i32 = arith.constant 0 : i32
    %c0_i32_0 = arith.constant 0 : i32
    %c0_i32_1 = arith.constant 0 : i32
    return %arg0, %c0_i32, %c0_i32_0 : i32, i32, i32
  }
  func.func @transform_1(%arg0: i32, %arg1: i32) -> (i32, i32, i32) {
    %c0_i32 = arith.constant 0 : i32
    %c0_i32_0 = arith.constant 0 : i32
    %c0_i32_1 = arith.constant 0 : i32
    %c0_i32_2 = arith.constant 0 : i32
    return %c0_i32, %c0_i32_0, %c0_i32_1 : i32, i32, i32
  }
  func.func @transform_2(%arg0: i32, %arg1: i32) -> (i32, i32) {
    %c0_i32 = arith.constant 0 : i32
    %c0_i32_0 = arith.constant 0 : i32
    %c0_i32_1 = arith.constant 0 : i32
    return %c0_i32, %c0_i32_0 : i32, i32
  }
  func.func @transform_3(%arg0: i32, %arg1: i32) -> (i32, i32) {
    %c0_i32 = arith.constant 0 : i32
    %c0_i32_0 = arith.constant 0 : i32
    return %c0_i32, %arg1 : i32, i32
  }
  func.func @transform_4(%arg0: i32, %arg1: i32) -> (i32, i32, i32) {
    %c0_i32 = arith.constant 0 : i32
    %c0_i32_0 = arith.constant 0 : i32
    return %arg0, %c0_i32, %arg1 : i32, i32, i32
  }
  func.func @transform_5(%arg0: i32, %arg1: i32) -> (i32, i32, i32) {
    %c0_i32 = arith.constant 0 : i32
    %c0_i32_0 = arith.constant 0 : i32
    return %arg0, %c0_i32, %arg1 : i32, i32, i32
  }
  func.func @transform_6(%arg0: i32, %arg1: i32) -> (i32, i32, i32) {
    %c0_i32 = arith.constant 0 : i32
    %c0_i32_0 = arith.constant 0 : i32
    return %arg0, %c0_i32, %arg1 : i32, i32, i32
  }
  func.func @transform_7(%arg0: i32, %arg1: i32) -> (i32, i32, i32, i32) {
    %c0_i32 = arith.constant 0 : i32
    %c0_i32_0 = arith.constant 0 : i32
    %c0_i32_1 = arith.constant 0 : i32
    return %arg0, %arg1, %c0_i32, %c0_i32_0 : i32, i32, i32, i32
  }
}

</mosaic_0001>

<bundles_post_ra>
// kernel: net_wrapper_forward.1
= control target key start
LH: loop header
LB: loop body
LE: loop exit
PB: predicated region body
PF: predicated region fallthrough
CT: control target
= control target key end

     0   :  { %s1792_s24 = smov 0   ;;  %s1794_s25 = smov 0   ;;  %s1968_s0 = inlined_call_operand.vmem [shape: f32[2,4,290], index: 0, kind: input, shape index: {}]   ;;  %s1969_s1 = inlined_call_operand.vmem [shape: f32[9,8,4], index: 1, kind: input, shape index: {}]   ;;  %s1970_s2 = inlined_call_operand.vmem [shape: f32[8,1], index: 2, kind: input, shape index: {}]   ;;  %s1971_s3 = inlined_call_operand.vmem [shape: f32[2,256], index: 3, kind: input, shape index: {}]   ;;  %s1972_s4 = inlined_call_operand.vmem [shape: f32[2,8,256], index: 4, kind: input, shape index: {}]   ;;  %s1973_s5 = inlined_call_operand.vmem [shape: s8[2,8,256], index: 5, kind: input, shape index: {}]   ;;  %s1974_s6 = inlined_call_operand.vmem [shape: f32[2,8,256], index: 6, kind: output, shape index: {0}]   ;;  %s1975_s7 = inlined_call_operand.vmem [shape: f32[2,1,1,128], index: 7, kind: output, shape index: {1}]  }
   0x1   :  { %s1796_s26 = smov 0  }
   0x2 LB: > { %s30_s27 = sadd.s32 1, %s1731_s25  ;;  %p1585_p0 = scmp.ge.s32.totalorder %s1735_s26, 1  ;;  %s1735_s26 = sphi %s1796_s26, %s18_s26   ;;  %s1731_s25 = sphi %s1794_s25, %s1977_s25   ;;  %s1727_s24 = sphi %s1792_s24, %s1976_s24  }
   0x3   : > { %p32_p1 = scmp.ge.s32.totalorder %s30_s27, 2  ;;  %p301_p2 = scmp.lt.s32.totalorder %s1735_s26, 3 }
   0x5   : > { %s1979_s27 = smov (%p32_p1, %s30_s27), 0  ;;  %p302_p3 = pnand %p1585_p0, %p301_p2 }
   0x6   : > { %v418_v0 = vlaneseq (!%p302_p3)  ;;  %p366_p4 = scmp.lt.s32.totalorder (!%p302_p3), %s1727_s24, 1  ;;  %v1593_v2 = vld [vmem:[%s1971_s3 + $0x1] ss:$2 sm:$0x3] (!%p302_p3)  ;;  %s1737_s13 = smov (!%p302_p3), 18   ;;  %v1744_v16 = vmov (!%p302_p3), 0.0  }
   0x7   : > { %305 = sbr.rel (%p302_p3) target bundleno = 772 (0x304), region = 44  ;;  %v413_v3 = vld [vmem:[%s1971_s3] ss:$2 sm:$0x3] (!%p302_p3)  ;;  %s1738_s14 = smov (!%p302_p3), 2   ;;  %912 = vmatprep.mubr.f32.mxu0 (!%p302_p3), %v1744_v16  ;;  %518 = vmatprep.mubr.f32.mxu1 (!%p302_p3), %v1744_v16  ;;  %vm926_vm0 = vcmask (!%p302_p3), 146432  }
   0x8   : > { %v419_v1 = vshrl.u32 (!%p302_p3), %v418_v0, 7  ;;  %s1739_s15 = smov (!%p302_p3), 32   ;;  %s1740_s16 = smov (!%p302_p3), 16   ;;  %vm1031_vm1 = vcmask (!%p302_p3), 261120   ;;  %vm838_vm2 = vcmask (!%p302_p3), 908288   ;;  %vm449_vm3 = vcmask (!%p302_p3), 1043456  }
   0x9   : > { %s1741_s17 = smov (!%p302_p3), 34   ;;  %s1742_s18 = smov (!%p302_p3), 111   ;;  %vm620_vm4 = vcmask (!%p302_p3), 15360   ;;  %vm445_vm5 = vcmask (!%p302_p3), 31744   ;;  %v1609_v40 = vld [vmem:[%s1969_s1 + $0x20] sm:$0xff] (!%p302_p3)  ;;  %vm442_vm6 = vcmask (!%p302_p3), 1039360  }
   0xa   : > { %v420_v4 = vsub.s32 (!%p302_p3), 0, %v419_v1  ;;  %v424_v5 = vsub.s32 (!%p302_p3), 1, %v419_v1  ;;  %s1743_s19 = smov (!%p302_p3), 127   ;;  %s1745_s20 = smov (!%p302_p3), 110   ;;  %vm725_vm7 = vcmask (!%p302_p3), 130048   ;;  %vm1232_vm8 = vcmask (!%p302_p3), 277504  }
   0xb   : > { %s1746_s21 = smov (!%p302_p3), 96   ;;  %s1747_s28 = smov (!%p302_p3), 95   ;;  %v1594_v54 = vld [vmem:[%s1969_s1 + $0x8] sm:$0xff] (!%p302_p3)  ;;  %v429_v62 = vld [vmem:[%s1969_s1] sm:$0xff] (!%p302_p3)  ;;  %vm943_vm9 = vcmask (!%p302_p3), 900096   ;;  %vm1048_vm10 = vcmask (!%p302_p3), 785408  }
   0xc   : > { %v611_v6 = vrot.slane (!%p302_p3), %v1593_v2, %v420_v4  ;;  %v615_v7 = vrot.slane (!%p302_p3), %v1593_v2, %v424_v5  ;;  %v421_v8 = vrot.slane (!%p302_p3), %v413_v3, %v420_v4  ;;  %v425_v9 = vrot.slane (!%p302_p3), %v413_v3, %v424_v5  ;;  %s1748_s29 = smov (!%p302_p3), 126   ;;  %s1749_s11 = smov (!%p302_p3), 112   ;;  %v1332_v5 = vld [vmem:[%s1970_s2] sm:$0xff] (!%p302_p3) }
   0xd   : > { %v1750_v2 = vmov (!%p302_p3), 0   ;;  %vm637_vm11 = vcmask (!%p302_p3), 1031168   ;;  %vm1144_vm12 = vcmask (!%p302_p3), 777216   ;;  %vm742_vm13 = vcmask (!%p302_p3), 916480  }
   0xe   : > { %s1981_s24 = smov (!%p366_p4, %s1727_s24), 1  ;;  %v616_v10 = vcombine.low %v611_v6, %v615_v7  ;;  %v1824_v11 = vcombine.low %v421_v8, %v425_v9  ;;  %1694 = vset.pattern.permute.xlu1 %v1750_v2  ;;  %1695 = vset.pattern.permute.xlu0 %v1750_v2  ;;  %vm1249_vm14 = vcmask 769024  }
   0xf   : > { %s1652_s9 = smul.u32 12, %s1981_s24  ;;  %s1633_s8 = sshll.u32 %s1981_s24, 4 }
  0x10   : > { %923 = vrot.lane.b32.xlu0 %v616_v10, %s1737_s13  ;;  %617 = vrot.lane.b32.xlu1 %v616_v10, %s1738_s14  ;;  %s1751_s13 = smov 94  }
  0x11   : > { %s1822_s12 = scalar_lea.vmem %s1968_s0, %s1652_s9 }
  0x12   : > { %v1827_v12 = vld [vmem:[%s1822_s12] sm:$0xff]  ;;  %v826_v14 = vld [vmem:[%s1822_s12 + $0x8] sm:$0xf] }
  0x13   : > { %v1833_v13 = vcombine.high %v1827_v12, %v1827_v12  ;;  %v430_v15 = vld [vmem:[%s1822_s12 + $0x8] sm:$0xf]  ;;  %v428_v43 = vmul.f32 %v1827_v12, %v1824_v11 }
  0x14   : > { %1028 = vrot.lane.b32.xlu0 %v1824_v11, %s1739_s15  ;;  %722 = vrot.lane.b32.xlu1 %v1824_v11, %s1740_s16  ;;  %v922_v18 = vld [vmem:[%s1822_s12 + $0x8] sm:$0xf]  ;;  %s405_s15 = scalar_lea.vmem %s1974_s6, %s1633_s8 }
  0x15   : > { %v1027_v23 = vld [vmem:[%s1822_s12 + $0x8] sm:$0xf]  ;;  %v526_v51 = vcombine.high %v428_v43, %v428_v43 }
  0x16   : > { %v606_v33 = vld [vmem:[%s1822_s12 + $0x8] sm:$0xf] }
  0x17   : > { %v1132_v59 = vld [vmem:[%s1822_s12 + $0x8] sm:$0xf] }
  0x18   : > { %1229 = vrot.lane.b32.xlu0 %v616_v10, %s1741_s17  ;;  %834 = vrot.lane.b32.xlu1 %v1833_v13, %s1742_s18  ;;  %v721_v63 = vld [vmem:[%s1822_s12 + $0x8] sm:$0xf] }
  0x19   : > { %v1228_v3 = vld [vmem:[%s1822_s12 + $0x8] sm:$0xf]  ;;  %s1634_s12 = sshll.u32 %s1981_s24, 2 }
  0x1c   : > { %836 = vrot.lane.b32.xlu0 %v826_v14, %s1742_s18  ;;  %832 = vrot.lane.b32.xlu1 %v1827_v12, %s1742_s18  ;;  %s395_s18 = scalar_lea.vmem %s1973_s5, %s1634_s12 }
  0x20   : > { %438 = vrot.lane.b32.xlu0 %v1833_v13, %s1743_s19  ;;  %440 = vrot.lane.b32.xlu1 %v430_v15, %s1743_s19 }
  0x24   : > { %436 = vrot.lane.b32.xlu0 %v1827_v12, %s1743_s19 }
  0x82   : > { %v924_v17 = vpop.permute.xlu0 %923  ;;  %v618_v19 = vpop.permute.xlu1 %617 }
  0x83   : > { %v925_v20 = vrot.slane %v924_v17, 4  ;;  %v619_v34 = vrot.slane %v618_v19, 4 }
  0x85   : > { %v931_v21 = vmul.f32 %v925_v20, %v922_v18  ;;  %v927_v25 = vsel %vm926_vm0, %v925_v20, %v924_v17  ;;  %v625_v41 = vmul.f32 %v619_v34, %v606_v33  ;;  %v621_v44 = vsel %vm620_vm4, %v619_v34, %v618_v19 }
  0x86   : > { %v1029_v22 = vpop.permute.xlu0 %1028  ;;  %v1845_v24 = vpop.permute.xlu1 %722  ;;  %v930_v29 = vmul.f32 %v927_v25, %v1827_v12  ;;  %v624_v50 = vmul.f32 %v1827_v12, %v621_v44 }
  0x87   : > { %v1030_v26 = vrot.slane %v1029_v22, 4  ;;  %941 = vrot.lane.b32.xlu1 %v931_v21, %s1745_s20  ;;  %v724_v42 = vrot.slane %v1845_v24, 4  ;;  %v1617_v21 = vld [vmem:[%s1969_s1 + $0x30] sm:$0xff] }
  0x88   : > { %v936_v35 = vcombine.high %v930_v29, %v930_v29  ;;  %v630_v58 = vcombine.high %v624_v50, %v624_v50 }
  0x89   : > { %v1032_v27 = vsel %vm1031_vm1, %v1030_v26, %v1029_v22  ;;  %v1036_v28 = vmul.f32 %v1030_v26, %v1027_v23  ;;  %v726_v48 = vsel %vm725_vm7, %v724_v42, %v1845_v24  ;;  %v730_v1 = vmul.f32 %v724_v42, %v721_v63  ;;  %v1601_v26 = vld [vmem:[%s1969_s1 + $0x10] sm:$0xff] }
  0x8a   : > { %v1035_v30 = vmul.f32 %v1032_v27, %v1827_v12  ;;  %v1849_v31 = vpop.permute.xlu0 %1229  ;;  %v835_v32 = vpop.permute.xlu1 %834  ;;  %v729_v55 = vmul.f32 %v1827_v12, %v726_v48 }
  0x8b   : > { %1046 = vrot.lane.b32.xlu1 %v1036_v28, %s1746_s21  ;;  %v1231_v49 = vrot.slane %v1849_v31, 4 }
  0x8c   : > { %1042 = vrot.lane.b32.xlu0 %v1035_v30, %s1746_s21  ;;  %v1041_v52 = vcombine.high %v1035_v30, %v1035_v30  ;;  %v735_v61 = vcombine.high %v729_v55, %v729_v55 }
  0x8d   : > { %v1233_v57 = vsel %vm1232_vm8, %v1231_v49, %v1849_v31  ;;  %v1237_v4 = vmul.f32 %v1231_v49, %v1228_v3  ;;  %v1621_v31 = vld [vmem:[%s1969_s1 + $0x38] sm:$0xff] }
  0x8e   : > { %v837_v36 = vpop.permute.xlu0 %836  ;;  %v833_v37 = vpop.permute.xlu1 %832  ;;  %v1236_v60 = vmul.f32 %v1233_v57, %v1827_v12 }
  0x8f   : > { %937 = vrot.lane.b32.xlu1 %v930_v29, %s1745_s20  ;;  %v840_v38 = vsel %vm838_vm2, %v835_v32, %v837_v36  ;;  %v839_v39 = vsel %vm838_vm2, %v833_v37, %v835_v32  ;;  %v1605_v36 = vld [vmem:[%s1969_s1 + $0x18] sm:$0xff] }
  0x90   : > { %939 = vrot.lane.b32.xlu0 %v936_v35, %s1745_s20  ;;  %1610 = vmatprep.subr.msk.mxu0 %vm449_vm3, %v840_v38  ;;  %v1242_v0 = vcombine.high %v1236_v60, %v1236_v60 }
  0x91   : > { %1611 = vmatpush1.msk.msra.mxu0 %vm449_vm3, %v839_v39 }
  0x92   : > { %v439_v45 = vpop.permute.xlu0 %438  ;;  %v441_v46 = vpop.permute.xlu1 %440  ;;  %1612 = vmatmul.mubr.msk.f32.vlgmr.msra.gmra.mrb[0].mxu0 %vm445_vm5, %v1609_v40 }
  0x93   : > { %1140 = vrot.lane.b32.xlu1 %v1833_v13, %s1747_s28  ;;  %v444_v47 = vsel %vm442_vm6, %v439_v45, %v441_v46  ;;  %1017 = vmatprep.mubr.f32.mxu0 %v1744_v16  ;;  %v1613_v13 = vld [vmem:[%s1969_s1 + $0x28] sm:$0xff] }
  0x94   : > { %635 = vrot.lane.b32.xlu0 %v625_v41, %s1748_s29  ;;  %1595 = vmatprep.subr.msk.mxu1 %vm449_vm3, %v444_v47 }
  0x96   : > { %v437_v53 = vpop.permute.xlu0 %436 }
  0x97   : > { %631 = vrot.lane.b32.xlu1 %v624_v50, %s1748_s29  ;;  %v443_v56 = vsel %vm442_vm6, %v437_v53, %v439_v45 }
  0x98   : > { %1044 = vrot.lane.b32.xlu0 %v1041_v52, %s1746_s21  ;;  %1596 = vmatpush1.msk.msra.mxu1 %vm449_vm3, %v443_v56  ;;  %s412_s21 = scalar_lea.vmem %s1975_s7, %s1981_s24 }
  0x99   : > { %1597 = vmatmul.mubr.msk.f32.vlgmr.msra.gmra.mrb[0].mxu1 %vm445_vm5, %v1594_v54  ;;  %1598 = vmatprep.subr.msk.mxu1 %vm449_vm3, %v526_v51 }
  0x9a   : > { %1599 = vmatpush1.msk.msra.mxu1 %vm449_vm3, %v428_v43  ;;  %598 = vmatprep.mubr.f32.mxu1 %v1744_v16 }
  0x9b   : > { %633 = vrot.lane.b32.xlu1 %v630_v58, %s1748_s29 }
  0x9c   : > { %1142 = vrot.lane.b32.xlu0 %v1132_v59, %s1747_s28 }
  0x9f   : > { %738 = vrot.lane.b32.xlu1 %v735_v61, %s1749_s11 }
  0xa0   : > { %1138 = vrot.lane.b32.xlu0 %v1827_v12, %s1747_s28 }
  0xa1   : > { %1600 = vmatmul.mubr.msk.f32.vlgmr.msra.gmra.mrb[0].mxu1 %vm445_vm5, %v429_v62 }
  0xa2   : > { %711 = vmatprep.mubr.f32.mxu1 %v1744_v16 }
  0xa3   : > { %1245 = vrot.lane.b32.xlu1 %v1242_v0, %s1751_s13 }
  0xa4   : > { %740 = vrot.lane.b32.xlu0 %v730_v1, %s1749_s11 }
  0xa7   : > { %736 = vrot.lane.b32.xlu1 %v729_v55, %s1749_s11  ;;  %s385_s11 = scalar_lea.vmem %s1972_s4, %s1633_s8 }
  0xa8   : > { %1247 = vrot.lane.b32.xlu0 %v1237_v4, %s1751_s13  ;;  %v1342_v49 = vld [vmem:[%s385_s11] sm:$0xff]  ;;  %v1343_v50 = vld [vmem:[%s385_s11 + $0x8] sm:$0xff] }
  0xa9   : > { %v1354_v62 = vsub.f32 2.1, %v1343_v50 }
  0xab   : > { %1335 = vperm.xlu1 %1694, %v1332_v5  }
  0xac   : > { %1243 = vrot.lane.b32.xlu0 %v1236_v60, %s1751_s13  ;;  %v1353_v60 = vsub.f32 2.1, %v1342_v49 }
  0xf9   : > { %v942_v6 = vpop.permute.xlu1 %941 }
  0xfd   : > { %v1047_v7 = vpop.permute.xlu1 %1046 }
  0xfe   : > { %v1043_v8 = vpop.permute.xlu0 %1042 }
 0x101   : > { %v938_v9 = vpop.permute.xlu1 %937 }
 0x102   : > { %v940_v10 = vpop.permute.xlu0 %939 }
 0x103   : > { %v944_v11 = vsel %vm943_vm9, %v938_v9, %v940_v10  ;;  %v945_v12 = vsel %vm943_vm9, %v940_v10, %v942_v6 }
 0x104   : > { %1614 = vmatprep.subr.msk.mxu0 %vm449_vm3, %v945_v12 }
 0x105   : > { %v1141_v14 = vpop.permute.xlu1 %1140  ;;  %1615 = vmatpush1.msk.msra.mxu0 %vm449_vm3, %v944_v11  ;;  %v1344_v11 = vld [vmem:[%s395_s18] sm:$0xf] }
 0x106   : > { %v636_v15 = vpop.permute.xlu0 %635  ;;  %1616 = vmatmul.mubr.msk.f32.vlgmr.msra.gmra.mrb[0].mxu0 %vm445_vm5, %v1613_v13  ;;  %v1345_v12 = vunpack.c.0.s8 %v1344_v11  ;;  %v1346_v13 = vunpack.c.1.s8 %v1344_v11 }
 0x107   : > { %1122 = vmatprep.mubr.f32.mxu0 %v1744_v16 }
 0x109   : > { %v632_v17 = vpop.permute.xlu1 %631 }
 0x10a   : > { %v1045_v18 = vpop.permute.xlu0 %1044 }
 0x10b   : > { %v1049_v19 = vsel %vm1048_vm10, %v1043_v8, %v1045_v18  ;;  %v1050_v20 = vsel %vm1048_vm10, %v1045_v18, %v1047_v7  ;;  %v1348_v18 = vcvt.s32.f32 %v1346_v13 }
 0x10c   : > { %1618 = vmatprep.subr.msk.mxu0 %vm449_vm3, %v1050_v20 }
 0x10d   : > { %v634_v22 = vpop.permute.xlu1 %633  ;;  %1619 = vmatpush1.msk.msra.mxu0 %vm449_vm3, %v1049_v19 }
 0x10e   : > { %v638_v23 = vsel %vm637_vm11, %v632_v17, %v634_v22  ;;  %v639_v24 = vsel %vm637_vm11, %v634_v22, %v636_v15  ;;  %v1143_v25 = vpop.permute.xlu0 %1142  ;;  %1620 = vmatmul.mubr.msk.f32.vlgmr.msra.gmra.mrb[0].mxu0 %vm445_vm5, %v1617_v21  ;;  %v1376_v15 = vmul.f32 28.0, %v1354_v62  ;;  %v1347_v17 = vcvt.s32.f32 %v1345_v12 }
 0x10f   : > { %v1146_v27 = vsel %vm1144_vm12, %v1141_v14, %v1143_v25  ;;  %1602 = vmatprep.subr.msk.mxu1 %vm449_vm3, %v639_v24  ;;  %1218 = vmatprep.mubr.f32.mxu0 %v1744_v16 }
 0x110   : > { %1603 = vmatpush1.msk.msra.mxu1 %vm449_vm3, %v638_v23  ;;  %1622 = vmatprep.subr.msk.mxu0 %vm449_vm3, %v1146_v27  ;;  %v1395_v25 = vmul.f32 10.0, %v1347_v17 }
 0x111   : > { %v739_v28 = vpop.permute.xlu1 %738  ;;  %1604 = vmatmul.mubr.msk.f32.vlgmr.msra.gmra.mrb[0].mxu1 %vm445_vm5, %v1601_v26 }
 0x112   : > { %v1139_v29 = vpop.permute.xlu0 %1138  ;;  %816 = vmatprep.mubr.f32.mxu1 %v1744_v16 }
 0x113   : > { %v1145_v30 = vsel %vm1144_vm12, %v1139_v29, %v1141_v14  ;;  %v1375_v14 = vmul.f32 28.0, %v1353_v60  ;;  %v1396_v29 = vmul.f32 10.0, %v1348_v18 }
 0x114   : > { %1623 = vmatpush1.msk.msra.mxu0 %vm449_vm3, %v1145_v30 }
 0x115   : > { %v1246_v32 = vpop.permute.xlu1 %1245 }
 0x116   : > { %v741_v33 = vpop.permute.xlu0 %740  ;;  %1624 = vmatmul.mubr.msk.f32.vlgmr.msra.gmra.mrb[0].mxu0 %vm445_vm5, %v1621_v31 }
 0x117   : > { %v744_v34 = vsel %vm742_vm13, %v739_v28, %v741_v33  ;;  %1323 = vmatprep.mubr.f32.mxu0 %v1744_v16  ;;  %v1625_v16 = vld [vmem:[%s1969_s1 + $0x40] sm:$0xff] }
 0x118   : > { %1606 = vmatprep.subr.msk.mxu1 %vm449_vm3, %v744_v34 }
 0x119   : > { %v737_v35 = vpop.permute.xlu1 %736 }
 0x11a   : > { %v743_v37 = vsel %vm742_vm13, %v737_v35, %v739_v28  ;;  %v1248_v38 = vpop.permute.xlu0 %1247 }
 0x11b   : > { %v1251_v39 = vsel %vm1249_vm14, %v1246_v32, %v1248_v38  ;;  %1607 = vmatpush1.msk.msra.mxu1 %vm449_vm3, %v743_v37  ;;  %v1397_v37 = vadd.f32 1.0, %v1395_v25 }
 0x11c   : > { %1608 = vmatmul.mubr.msk.f32.vlgmr.msra.gmra.mrb[0].mxu1 %vm445_vm5, %v1605_v36  ;;  %1626 = vmatprep.subr.msk.mxu0 %vm449_vm3, %v1251_v39 }
 0x11e   : > { %v1244_v40 = vpop.permute.xlu0 %1243 }
 0x11f   : > { %v1250_v41 = vsel %vm1249_vm14, %v1244_v40, %v1246_v32  ;;  %v1398_v40 = vadd.f32 1.0, %v1396_v29 }
 0x120   : > { %1627 = vmatpush1.msk.msra.mxu0 %vm449_vm3, %v1250_v41 }
 0x121   : > { %1628 = vmatmul.mubr.msk.f32.vlgmr.msra.gmra.mrb[0].mxu0 %vm445_vm5, %v1625_v16 }
 0x12a   : > { %v1336_v45 = vpop.permute.xlu1 %1335 }
 0x1ef   : > { %v818_v42 = vpop.f32.mrb[0].mxu1 }
 0x1f0   : > { %v820_v43 = vpop.f32.mrb[1].mxu1 }
 0x1f4   : > { %v1325_v44 = vpop.f32.mrb[0].mxu0 }
 0x1f5   : > { %v1636_v46 = vadd.f32 %v1325_v44, %v818_v42  ;;  %v1327_v47 = vpop.f32.mrb[1].mxu0 }
 0x1f6   : > { %v1637_v48 = vadd.f32 %v1327_v47, %v820_v43 }
 0x1f7   : > { %v1338_v51 = vadd.f32 %v1636_v46, %v1336_v45 }
 0x1f8   : > { %v1339_v52 = vadd.f32 %v1637_v48, %v1336_v45 }
 0x1f9   : > { %1340 = vst [vmem:[%s405_s15] sm:$0xff] %v1338_v51  ;;  %v1349_v53 = vsub.f32 %v1342_v49, %v1338_v51 }
 0x1fa   : > { %1341 = vst [vmem:[%s405_s15 + $0x8] sm:$0xff] %v1339_v52  ;;  %v1350_v54 = vsub.f32 %v1343_v50, %v1339_v52 }
 0x1fb   : > { %v1351_v55 = vand.u32 2147483647, %v1349_v53 }
 0x1fc   : > { %v1352_v56 = vand.u32 2147483647, %v1350_v54 }
 0x1fd   : > { %v1357_v57 = vmax.f32 %v1351_v55, 1e-20  ;;  %vm1355_vm15 = vcmp.lt.f32.partialorder %v1351_v55, 0.5  ;;  %v1629_v23 = vadd.f32 -0.5, %v1351_v55 }
 0x1fe   : > { %v1358_v58 = vmax.f32 %v1352_v56, 1e-20  ;;  %vm1356_vm0 = vcmp.lt.f32.partialorder %v1352_v56, 0.5  ;;  %v1630_v27 = vadd.f32 -0.5, %v1352_v56 }
 0x1ff   : > { %1697 = vlog2.f32 %v1357_v57 }
 0x200   : > { %1699 = vlog2.f32 %v1358_v58 }
 0x209   : > { %v1698_v59 = vpop.eup %1697 }
 0x20a   : > { %v1700_v61 = vpop.eup %1699  ;;  %v1360_v63 = vmul.f32 0.6931472, %v1698_v59 }
 0x20b   : > { %v1362_v0 = vmul.f32 0.6931472, %v1700_v61 }
 0x20c   : > { %v1363_v1 = vsel %vm1355_vm15, %v1360_v63, -0.6931472 }
 0x20d   : > { %v1364_v2 = vsel %vm1356_vm0, %v1362_v0, -0.6931472  ;;  %v1365_v3 = vmul.f32 %v1363_v1, %v1353_v60 }
 0x20e   : > { %v1366_v4 = vmul.f32 %v1364_v2, %v1354_v62 }
 0x20f   : > { %v1367_v5 = vmul.f32 1.442695, %v1365_v3 }
 0x210   : > { %v1369_v6 = vmul.f32 1.442695, %v1366_v4 }
 0x211   : > { %1701 = vpow2.f32 %v1367_v5 }
 0x212   : > { %1703 = vpow2.f32 %v1369_v6 }
 0x21b   : > { %v1702_v7 = vpop.eup %1701 }
 0x21c   : > { %v1704_v8 = vpop.eup %1703  ;;  %v1371_v9 = vadd.f32 1.0, %v1702_v7  ;;  %v1377_v19 = vmul.f32 %v1702_v7, %v1375_v14 }
 0x21d   : > { %v1372_v10 = vadd.f32 1.0, %v1704_v8  ;;  %v1378_v21 = vmul.f32 %v1704_v8, %v1376_v15 }
 0x21e   : > { %1705 = vrcp.f32 %v1371_v9 }
 0x21f   : > { %1707 = vrcp.f32 %v1372_v10 }
 0x220   : > { %1709 = vlog2.f32 %v1371_v9 }
 0x221   : > { %1711 = vlog2.f32 %v1372_v10 }
 0x228   : > { %v1706_v20 = vpop.eup %1705 }
 0x229   : > { %v1708_v22 = vpop.eup %1707  ;;  %v1379_v24 = vmul.f32 %v1706_v20, %v1377_v19 }
 0x22a   : > { %v1710_v26 = vpop.eup %1709  ;;  %v1380_v28 = vmul.f32 %v1708_v22, %v1378_v21 }
 0x22b   : > { %v1712_v30 = vpop.eup %1711  ;;  %v1382_v31 = vmul.f32 0.6931472, %v1710_v26  ;;  %v1389_v32 = vmul.f32 %v1629_v23, %v1379_v24 }
 0x22c   : > { %v1384_v33 = vmul.f32 0.6931472, %v1712_v30  ;;  %v1390_v34 = vmul.f32 %v1630_v27, %v1380_v28 }
 0x22d   : > { %v1385_v35 = vmul.f32 14.0, %v1382_v31  ;;  %v1391_v36 = vsel %vm1355_vm15, 0.0, %v1389_v32 }
 0x22e   : > { %v1386_v38 = vmul.f32 14.0, %v1384_v33  ;;  %v1392_v39 = vsel %vm1356_vm0, 0.0, %v1390_v34 }
 0x22f   : > { %v1393_v16 = vadd.f32 %v1391_v36, %v1385_v35 }
 0x230   : > { %v1394_v41 = vadd.f32 %v1392_v39, %v1386_v38 }
 0x231   : > { %v1399_v42 = vmul.f32 %v1397_v37, %v1393_v16 }
 0x232   : > { %v1400_v43 = vmul.f32 %v1398_v40, %v1394_v41 }
 0x234   : > { %v1401_v44 = vadd.f32 %v1400_v43, %v1399_v42 }
 0x236   : > { %1402 = vadd.xlane.f32.xlu0 %v1401_v44 }
 0x2c3   : > { %v1403_v45 = vpop.xlane.xlu0 %1402 }
 0x2c4   : > { %v1404_v46 = vrot.slane %v1403_v45, 4 }
 0x2c6   : > { %v1405_v47 = vadd.f32 %v1404_v46, %v1403_v45 }
 0x2c8   : > { %v1406_v48 = vrot.slane %v1405_v47, 2 }
 0x2ca   : > { %v1407_v49 = vadd.f32 %v1406_v48, %v1405_v47 }
 0x2cc   : > { %v1408_v50 = vrot.slane %v1407_v49, 1 }
 0x2ce   : > { %v1409_v51 = vadd.f32 %v1408_v50, %v1407_v49 }
 0x2d0   : > { %1653 = vpush %v1409_v51 }
 0x301   : > { %s1654_s22 = spop %1653 }
 0x302   : > { %v1411_v52 = vstv %s1654_s22 }
 0x303   : > { %1412 = vst [vmem:[%s412_s21] sm:$0x1] %v1411_v52 }
 0x304 PF: > { %s18_s26 = sadd.s32 1, %s1735_s26   ;;  %s1976_s24 = smov %s1731_s25 }
 0x305   : > { %p15_p5 = scmp.ge.s32.totalorder %s18_s26, 4   ;;  %s1977_s25 = smov %s1979_s27 }
 0x307   :  { %17 = sbr.rel (!%p15_p5) target bundleno = 2 (0x2), region = 104 }

</bundles_post_ra>
